<compile_context>
chip_gen: v7x
topology: tpu7x:2x2x1
jax: 0.10.0
libtpu: 0.0.40
codegen_flags: <defaults>
</compile_context>

<pallas_src>
import jax
import jax.numpy as jnp
from jax.experimental import pallas as pl
from jax.experimental.pallas import tpu as pltpu

EPSILON = 1e-20


def _masked_softmax_kernel(x_ref, m_ref, o_ref):
    # Blocks are (R, D) row-tiles in VMEM; softmax runs along the lane dim D.
    x = x_ref[...].astype(jnp.float32)
    x_max = jnp.max(x, axis=-1, keepdims=True)
    x_exp = jnp.exp(x - x_max)
    x_exp = x_exp * m_ref[...].astype(jnp.float32)   # mask kept compact (any dtype)
    denom = jnp.sum(x_exp, axis=-1, keepdims=True) + EPSILON
    o_ref[...] = (x_exp * pl.reciprocal(denom, approx=True)).astype(o_ref.dtype)


def _softmax_kernel(x_ref, o_ref):
    # mask=None fast path: no mask operand, no HBM traffic for a ones array.
    x = x_ref[...].astype(jnp.float32)
    x_max = jnp.max(x, axis=-1, keepdims=True)
    x_exp = jnp.exp(x - x_max)
    denom = jnp.sum(x_exp, axis=-1, keepdims=True) + EPSILON
    o_ref[...] = (x_exp * pl.reciprocal(denom, approx=True)).astype(o_ref.dtype)


def _rows_per_tile(n_rows, bytes_per_row, vmem_budget=12 << 20, max_rows=4096):
    """Rows per block.

    `bytes_per_row` must account for ALL operands of one row (x + mask + out).
    With Pallas' default double-buffering the live VMEM is ~ 2 * R *
    bytes_per_row, so we size R to keep that under `vmem_budget` (well below
    the 16 MiB default scoped-VMEM limit on v5e; far below v6e/v7x limits).
    R is a multiple of 8 (sublane) or the full row count, both legal extents.
    """
    r = (vmem_budget // (2 * max(1, bytes_per_row))) // 8 * 8
    r = max(8, min(max_rows, r))
    return n_rows if r >= n_rows else r


def mask_softmax(x, mask=None, dim=-1):
    """Masked softmax over `dim` (default last). Matches MaskSoftmax.forward."""
    ndim = x.ndim
    axis = dim if dim >= 0 else dim + ndim
    moved = axis != ndim - 1
    if moved:
        if mask is not None:
            mask = jnp.moveaxis(jnp.broadcast_to(mask, x.shape), axis, -1)
        x = jnp.moveaxis(x, axis, -1)

    lead_shape = x.shape
    D = lead_shape[-1]
    x2 = x.reshape(-1, D)
    N = x2.shape[0]

    if mask is not None and mask.shape != x.shape:
        # TODO(synk): compact broadcast masks get materialised here; a
        # batch-aware index_map could avoid the extra HBM traffic.
        mask = jnp.broadcast_to(mask, x.shape)
    m2 = None if mask is None else mask.reshape(-1, D)

    # Per-row bytes across every operand that moves through VMEM.
    bytes_per_row = D * (x2.dtype.itemsize + x2.dtype.itemsize
                         + (0 if m2 is None else m2.dtype.itemsize))
    R = _rows_per_tile(N, bytes_per_row)
    grid = (pl.cdiv(N, R),)
    row_spec = pl.BlockSpec((R, D), lambda i: (i, 0))
    out_shape = jax.ShapeDtypeStruct((N, D), x.dtype)
    compiler_params = pltpu.CompilerParams(dimension_semantics=("parallel",))

    if m2 is None:
        out2 = pl.pallas_call(
            _softmax_kernel,
            out_shape=out_shape,
            grid_spec=pltpu.PrefetchScalarGridSpec(
                num_scalar_prefetch=0,
                grid=grid,
                in_specs=[row_spec],
                out_specs=row_spec,
            ),
            compiler_params=compiler_params,
        )(x2)
    else:
        out2 = pl.pallas_call(
            _masked_softmax_kernel,
            out_shape=out_shape,
            grid_spec=pltpu.PrefetchScalarGridSpec(
                num_scalar_prefetch=0,
                grid=grid,
                in_specs=[row_spec, pl.BlockSpec((R, D), lambda i: (i, 0))],
                out_specs=row_spec,
            ),
            compiler_params=compiler_params,
        )(x2, m2)

    out = out2.reshape(lead_shape)
    if moved:
        out = jnp.moveaxis(out, -1, axis)
    return out


def mask_softmax_ref(x, mask=None):
    x_max = jnp.max(x, axis=-1, keepdims=True)
    x_exp = jnp.exp(x - x_max)
    if mask is not None:
        x_exp = x_exp * mask.astype(x_exp.dtype)
    return x_exp / (jnp.sum(x_exp, axis=-1, keepdims=True) + EPSILON)


if __name__ == "__main__":
    key = jax.random.PRNGKey(0)
    kx, km, kx2, km2 = jax.random.split(key, 4)

    # Tolerances loosened slightly for the approx (EUP) reciprocal.
    ATOL = RTOL = 2e-3

    # Main test: (B, S, D) = (2, 8, 128), f32 mask (as in the PyTorch usage).
    B, S, D = 2, 8, 128
    x = jax.random.normal(kx, (B, S, D), dtype=jnp.float32)
    mask = (jax.random.uniform(km, (B, S, D)) > 0.25).astype(jnp.float32)

    out = mask_softmax(x, mask)
    jax.block_until_ready(out)
    assert out.shape == x.shape and out.dtype == x.dtype
    assert jnp.allclose(out, mask_softmax_ref(x, mask), atol=ATOL, rtol=RTOL)

    # mask=None path: separate kernel variant, no ones-array materialisation.
    out_nm = mask_softmax(x, None)
    jax.block_until_ready(out_nm)
    assert jnp.allclose(out_nm, mask_softmax_ref(x, None), atol=ATOL, rtol=RTOL)

    # Multi-tile grid (partial last tile exercises OOB-block handling) +
    # compact bool mask cast in-kernel.
    x_big = jax.random.normal(kx2, (9, 600, 128), dtype=jnp.float32)
    m_big = jax.random.uniform(km2, (9, 600, 128)) > 0.25   # bool, 1 byte/elem
    out_big = mask_softmax(x_big, m_big)
    jax.block_until_ready(out_big)
    assert jnp.allclose(out_big, mask_softmax_ref(x_big, m_big), atol=ATOL, rtol=RTOL)

    # dim != -1 path (softmax over the middle axis).
    out_dim = mask_softmax(x, mask, dim=1)
    jax.block_until_ready(out_dim)
    ref_dim = jnp.moveaxis(
        mask_softmax_ref(jnp.moveaxis(x, 1, -1), jnp.moveaxis(mask, 1, -1)), -1, 1)
    assert jnp.allclose(out_dim, ref_dim, atol=ATOL, rtol=RTOL)

    print("KERNEL_OK")
</pallas_src>

<mosaic_0001>
module attributes {stable_mosaic.version = 11 : i64} {
  func.func @_masked_softmax_kernel(%arg0: i32, %arg1: memref<16x128xf32, #tpu.memory_space<vmem>>, %arg2: memref<16x128xf32, #tpu.memory_space<vmem>>, %arg3: memref<16x128xf32, #tpu.memory_space<vmem>>) attributes {dimension_semantics = [#tpu.dimension_semantics<parallel>], iteration_bounds = array<i64: 1>, scalar_prefetch = 0 : i64, scratch_operands = 0 : i64, tpu.core_type = #tpu.core_type<tc>, window_params = [{transform_indices = @transform_0, window_bounds = array<i64: 16, 128>}, {transform_indices = @transform_1, window_bounds = array<i64: 16, 128>}, {transform_indices = @transform_2, window_bounds = array<i64: 16, 128>}]} {
    %c0 = arith.constant 0 : index
    %c0_0 = arith.constant 0 : index
    %0 = vector.load %arg1[%c0, %c0_0] : memref<16x128xf32, #tpu.memory_space<vmem>>, vector<16x128xf32>
    %cst = arith.constant dense<0xFF800000> : vector<16xf32>
    %1 = vector.multi_reduction <maximumf>, %0, %cst [1] : vector<16x128xf32> to vector<16xf32>
    %2 = vector.shape_cast %1 : vector<16xf32> to vector<16x1xf32>
    %3 = vector.broadcast %2 : vector<16x1xf32> to vector<16x128xf32>
    %4 = arith.subf %0, %3 : vector<16x128xf32>
    %5 = math.exp %4 : vector<16x128xf32>
    %c0_1 = arith.constant 0 : index
    %c0_2 = arith.constant 0 : index
    %6 = vector.load %arg2[%c0_1, %c0_2] : memref<16x128xf32, #tpu.memory_space<vmem>>, vector<16x128xf32>
    %7 = arith.mulf %5, %6 : vector<16x128xf32>
    %cst_3 = arith.constant dense<0.000000e+00> : vector<16xf32>
    %8 = vector.multi_reduction <add>, %7, %cst_3 [1] : vector<16x128xf32> to vector<16xf32>
    %9 = vector.shape_cast %8 : vector<16xf32> to vector<16x1xf32>
    %cst_4 = arith.constant 9.99999968E-21 : f32
    %10 = vector.broadcast %cst_4 : f32 to vector<16x1xf32>
    %11 = arith.addf %9, %10 : vector<16x1xf32>
    %12 = tpu.reciprocal %11 {approx = true} : vector<16x1xf32> -> vector<16x1xf32>
    %13 = vector.broadcast %12 : vector<16x1xf32> to vector<16x128xf32>
    %14 = arith.mulf %7, %13 : vector<16x128xf32>
    %c0_5 = arith.constant 0 : index
    %c0_6 = arith.constant 0 : index
    %15 = vector.load %arg3[%c0_5, %c0_6] : memref<16x128xf32, #tpu.memory_space<vmem>>, vector<16x128xf32>
    tpu.vector_store %arg3[%c0_5, %c0_6], %14 {strides = array<i32>} : memref<16x128xf32, #tpu.memory_space<vmem>>, vector<16x128xf32>,
    return
  }
  func.func @transform_0(%arg0: i32) -> (i32, i32) {
    %c0_i32 = arith.constant 0 : i32
    %c0_i32_0 = arith.constant 0 : i32
    return %arg0, %c0_i32 : i32, i32
  }
  func.func @transform_1(%arg0: i32) -> (i32, i32) {
    %c0_i32 = arith.constant 0 : i32
    %c0_i32_0 = arith.constant 0 : i32
    return %arg0, %c0_i32 : i32, i32
  }
  func.func @transform_2(%arg0: i32) -> (i32, i32) {
    %c0_i32 = arith.constant 0 : i32
    %c0_i32_0 = arith.constant 0 : i32
    return %arg0, %c0_i32 : i32, i32
  }
}

</mosaic_0001>

<bundles_post_ra>
// kernel: tpu_custom_call.1
= control target key start
LH: loop header
LB: loop body
LE: loop exit
PB: predicated region body
PF: predicated region fallthrough
CT: control target
= control target key end

     0   :  { %7 = vsyncpa [#allocation3], 0  ;;  %s236_s0 = inlined_call_operand.hbm [shape: f32[16,128], index: 0, kind: input, shape index: {}]   ;;  %s237_s1 = inlined_call_operand.hbm [shape: f32[16,128], index: 1, kind: input, shape index: {}]   ;;  %s238_s2 = inlined_call_operand.hbm [shape: f32[16,128], index: 2, kind: output, shape index: {}]  }
   0x1   :  { %8 = vsyncpa [#allocation6], 0 }
   0x2   :  { %9 = vsyncpa [#allocation4], 0  ;;  %s171_s9 = smov [#allocation2]   ;;  %s99_s13 = scalar_lea.hbm %s236_s0, 256 }
   0x3   :  { %s15_s10 = sshll.u32 %s171_s9, 4  ;;  %p100_p0 = scmp.ne.s32.totalorder %s236_s0, %s99_s13  ;;  %s16_s10 = int_to_ptr.vmem [resolvable:$true] %s15_s10 }
   0x4   :  { %p103_p1 = scmp.lt.u32.totalorder %s99_s13, %s236_s0 }
   0x6   :  { %p105_p2 = pnand %p103_p1, %p100_p0 }
   0x8   :  { %108 = shalt.err (!%p105_p2)
}
   0x9   :  { %s109_s18 = scalar_lea.vmem %s16_s10, 256  ;;  %p114_p4 = scmp.lt.s32.totalorder %s16_s10, %s16_s10 }
   0xa   :  { %p110_p3 = scmp.ne.s32.totalorder %s16_s10, %s109_s18  ;;  %p115_p5 = scmp.lt.s32.totalorder %s109_s18, %s109_s18 }
   0xc   :  { %p116_p6 = por %p115_p5, %p114_p4 }
   0xe   :  { %p117_p7 = pnand %p116_p6, %p110_p3 }
  0x10   :  { %120 = shalt.err (!%p117_p7)
}
  0x11   :  { %s172_s19 = smov 128   ;;  %s173_s20 = smov 8  }
  0x12   :  { %21 = dma.hbm_to_vmem [thread:$0]  %s236_s0, 256, %s16_s10, [#allocation3], %s172_s19, %s172_s19, %s173_s20  }
  0x13   :  { %s174_s23 = smov [#allocation5]   ;;  %s121_s27 = scalar_lea.hbm %s237_s1, 256 }
  0x14   :  { %s27_s24 = sshll.u32 %s174_s23, 4  ;;  %p122_p8 = scmp.ne.s32.totalorder %s237_s1, %s121_s27  ;;  %s28_s24 = int_to_ptr.vmem [resolvable:$true] %s27_s24 }
  0x15   :  { %p125_p9 = scmp.lt.u32.totalorder %s121_s27, %s237_s1 }
  0x17   :  { %p127_p10 = pnand %p125_p9, %p122_p8 }
  0x19   :  { %130 = shalt.err (!%p127_p10)
}
  0x1a   :  { %s131_s4 = scalar_lea.vmem %s28_s24, 256  ;;  %p136_p12 = scmp.lt.s32.totalorder %s28_s24, %s28_s24 }
  0x1b   :  { %p132_p11 = scmp.ne.s32.totalorder %s28_s24, %s131_s4  ;;  %p137_p13 = scmp.lt.s32.totalorder %s131_s4, %s131_s4 }
  0x1d   :  { %p138_p0 = por %p137_p13, %p136_p12 }
  0x1f   :  { %p139_p1 = pnand %p138_p0, %p132_p11 }
  0x21   :  { %142 = shalt.err (!%p139_p1)
}
  0x22   :  { %33 = dma.hbm_to_vmem [thread:$0]  %s237_s1, 256, %s28_s24, [#allocation6], %s172_s19, %s172_s19, %s173_s20  }
  0x23   :  { %165 = dma.done.wait [#allocation3], 256  }
  0x24   :  { %166 = vsyncadd [#allocation3], 4294967040 }
  0x25   :  { %167 = dma.done.wait [#allocation6], 256  }
  0x26   :  { %168 = vsyncadd [#allocation6], 4294967040  ;;  %v40_v0 = vld [vmem:[#allocation2] sm:$0xff]  ;;  %v41_v1 = vld [vmem:[#allocation2 + $0x8] sm:$0xff]  ;;  %s175_s1 = smov [#allocation7]  }
  0x27   :  { %42 = vmax.xlane.f32.xlu0 %v40_v0  ;;  %v52_v8 = vld [vmem:[#allocation5] sm:$0xff]  ;;  %v53_v11 = vld [vmem:[#allocation5 + $0x8] sm:$0xff]  ;;  %s73_s6 = sshll.u32 %s175_s1, 4  ;;  %s74_s6 = int_to_ptr.vmem [resolvable:$true] %s73_s6 }
  0x28   :  { %s143_s7 = scalar_lea.vmem %s74_s6, 256  ;;  %p148_p3 = scmp.lt.s32.totalorder %s74_s6, %s74_s6 }
  0x29   :  { %p144_p2 = scmp.ne.s32.totalorder %s74_s6, %s143_s7  ;;  %p149_p4 = scmp.lt.s32.totalorder %s143_s7, %s143_s7 }
  0x2b   :  { %44 = vmax.xlane.f32.xlu0 %v41_v1  ;;  %p150_p5 = por %p149_p4, %p148_p3 }
  0x2d   :  { %p151_p6 = pnand %p150_p5, %p144_p2 }
  0xb4   :  { %v43_v2 = vpop.xlane.xlu0 %42 }
  0xb5   :  { %v46_v3 = vsub.f32 %v40_v0, %v43_v2 }
  0xb7   :  { %v48_v4 = vmul.f32 1.442695, %v46_v3 }
  0xb8   :  { %v45_v5 = vpop.xlane.xlu0 %44 }
  0xb9   :  { %91 = vpow2.f32 %v48_v4  ;;  %v47_v6 = vsub.f32 %v41_v1, %v45_v5 }
  0xbb   :  { %v50_v7 = vmul.f32 1.442695, %v47_v6 }
  0xbd   :  { %93 = vpow2.f32 %v50_v7 }
  0xc3   :  { %v92_v9 = vpop.eup %91 }
  0xc4   :  { %v54_v10 = vmul.f32 %v92_v9, %v52_v8 }
  0xc6   :  { %56 = vadd.xlane.f32.xlu1 %v54_v10 }
  0xc7   :  { %v94_v12 = vpop.eup %93 }
  0xc8   :  { %v55_v13 = vmul.f32 %v94_v12, %v53_v11 }
  0xca   :  { %58 = vadd.xlane.f32.xlu1 %v55_v13 }
 0x153   :  { %v57_v14 = vpop.xlane.xlu1 %56 }
 0x154   :  { %v60_v15 = vadd.f32 1e-20, %v57_v14 }
 0x156   :  { %95 = vrcp.f32 %v60_v15 }
 0x157   :  { %v59_v16 = vpop.xlane.xlu1 %58 }
 0x158   :  { %v61_v17 = vadd.f32 1e-20, %v59_v16 }
 0x15a   :  { %97 = vrcp.f32 %v61_v17 }
 0x160   :  { %v96_v18 = vpop.eup %95 }
 0x161   :  { %v64_v19 = vmul.f32 %v96_v18, %v54_v10 }
 0x163   :  { %66 = vst [vmem:[#allocation7] sm:$0xff] %v64_v19 }
 0x164   :  { %v98_v20 = vpop.eup %97 }
 0x165   :  { %v65_v21 = vmul.f32 %v98_v20, %v55_v13 }
 0x167   :  { %67 = vst [vmem:[#allocation7 + $0x8] sm:$0xff] %v65_v21 }
 0x168   :  { %154 = shalt.err (!%p151_p6)
}
 0x169   :  { %s155_s10 = scalar_lea.hbm %s238_s2, 256 }
 0x16a   :  { %p156_p7 = scmp.ne.s32.totalorder %s238_s2, %s155_s10  ;;  %p159_p8 = scmp.lt.u32.totalorder %s155_s10, %s238_s2 }
 0x16c   :  { %p161_p9 = pnand %p159_p8, %p156_p7 }
 0x16e   :  { %164 = shalt.err (!%p161_p9)
}
 0x16f   :  { %79 = dma.vmem_to_hbm [thread:$0]  %s74_s6, 256, %s238_s2, [#allocation4], %s172_s19, %s172_s19, %s173_s20  }
 0x170   :  { %169 = dma.done.wait [#allocation4], 256  }
 0x171   :  { %170 = vsyncadd [#allocation4], 4294967040 }
 0x172   :  { %83 = vsyncpa [#allocation3], 1 }
 0x173   :  { %84 = vsyncpa [#allocation6], 1 }
 0x174   :  { %85 = vsyncpa [#allocation4], 1 }

</bundles_post_ra>
